<compile_context>
chip_gen: v7x
topology: tpu7x:2x2x1
jax: 0.10.0
libtpu: 0.0.40
codegen_flags: <defaults>
</compile_context>

<pallas_src>
import jax
import jax.numpy as jnp
from jax.experimental import pallas as pl
from jax.experimental.pallas import tpu as pltpu

LANE = 128
SUBLANE = 8


def _round_up(n, m):
    return ((n + m - 1) // m) * m


def autoencoder_kernel(x_ref,
                       w1_ref, b1_ref,   # encoder linear 1: in_p  -> hid_p
                       w2_ref, b2_ref,   # encoder linear 2: hid_p -> lat_p
                       w3_ref, b3_ref,   # decoder linear 1: lat_p -> hid_p
                       w4_ref, b4_ref,   # decoder linear 2: hid_p -> in_p
                       recon_ref, z_ref):
    x = x_ref[...]                                            # (TB, in_p) bf16

    # ---- encoder ----
    h1 = jnp.dot(x, w1_ref[...], preferred_element_type=jnp.float32) + b1_ref[...]
    h1 = jnp.maximum(h1, 0.0)                                 # ReLU (f32)
    z = jnp.dot(h1.astype(jnp.bfloat16), w2_ref[...],
                preferred_element_type=jnp.float32) + b2_ref[...]

    # ---- decoder ----
    h2 = jnp.dot(z.astype(jnp.bfloat16), w3_ref[...],
                 preferred_element_type=jnp.float32) + b3_ref[...]
    h2 = jnp.maximum(h2, 0.0)                                 # ReLU (f32)
    recon = jnp.dot(h2.astype(jnp.bfloat16), w4_ref[...],
                    preferred_element_type=jnp.float32) + b4_ref[...]

    z_ref[...] = z.astype(z_ref.dtype)
    recon_ref[...] = recon.astype(recon_ref.dtype)


def autoencoder_forward(x, params):
    """Fused encode+decode. Returns (x_recon, z) at the logical (unpadded) shapes."""
    B, input_dim = x.shape
    w1, b1, w2, b2, w3, b3, w4, b4 = params
    hidden_dim = w1.shape[1]
    latent_dim = w2.shape[1]

    # lane-dense padded feature dims
    in_p = _round_up(input_dim, LANE)
    hid_p = _round_up(hidden_dim, LANE)
    lat_p = _round_up(latent_dim, LANE)

    # batch tile: large enough to amortize per-step overhead, VMEM-safe on
    # v7x's 64 MiB as well (footprint per tile ~= TB*128*(2+4+4) bytes,
    # double-buffered -> well under the default scoped limit for TB=512).
    tb = 512 if B >= 512 else _round_up(B, SUBLANE)
    b_pad = _round_up(B, tb)

    def pad2(a, r, c, dt):
        return jnp.pad(a, ((0, r - a.shape[0]), (0, c - a.shape[1]))).astype(dt)

    # zero-pad everything to lane-dense layouts; stream x/weights as bf16,
    # keep biases (and all post-dot math) in f32.
    x_p = pad2(x, b_pad, in_p, jnp.bfloat16)
    w1_p = pad2(w1, in_p, hid_p, jnp.bfloat16); b1_p = pad2(b1, 1, hid_p, jnp.float32)
    w2_p = pad2(w2, hid_p, lat_p, jnp.bfloat16); b2_p = pad2(b2, 1, lat_p, jnp.float32)
    w3_p = pad2(w3, lat_p, hid_p, jnp.bfloat16); b3_p = pad2(b3, 1, hid_p, jnp.float32)
    w4_p = pad2(w4, hid_p, in_p, jnp.bfloat16); b4_p = pad2(b4, 1, in_p, jnp.float32)

    grid = (b_pad // tb,)

    def resident(shape):
        # constant index_map -> fetched once, stays VMEM-resident across the grid
        return pl.BlockSpec(shape, lambda i: (0, 0))

    flops = 2 * b_pad * 2 * (in_p * hid_p + hid_p * lat_p)
    bytes_accessed = (x_p.size * 2                      # x in (bf16)
                      + b_pad * in_p * 4                # recon out (f32)
                      + b_pad * lat_p * 4               # z out (f32)
                      + 2 * (w1_p.size + w2_p.size + w3_p.size + w4_p.size))

    recon_p, z_p = pl.pallas_call(
        autoencoder_kernel,
        out_shape=(jax.ShapeDtypeStruct((b_pad, in_p), jnp.float32),   # x_recon
                   jax.ShapeDtypeStruct((b_pad, lat_p), jnp.float32)),  # z
        grid=grid,
        in_specs=[
            pl.BlockSpec((tb, in_p), lambda i: (i, 0)),   # x tile, streamed
            resident((in_p, hid_p)), resident((1, hid_p)),
            resident((hid_p, lat_p)), resident((1, lat_p)),
            resident((lat_p, hid_p)), resident((1, hid_p)),
            resident((hid_p, in_p)), resident((1, in_p)),
        ],
        out_specs=(pl.BlockSpec((tb, in_p), lambda i: (i, 0)),
                   pl.BlockSpec((tb, lat_p), lambda i: (i, 0))),
        compiler_params=pltpu.CompilerParams(
            dimension_semantics=("parallel",)),
        cost_estimate=pl.CostEstimate(flops=flops, transcendentals=0,
                                      bytes_accessed=bytes_accessed),
    )(x_p, w1_p, b1_p, w2_p, b2_p, w3_p, b3_p, w4_p, b4_p)

    # slice padded outputs back to logical shapes
    return recon_p[:B, :input_dim], z_p[:B, :latent_dim]


def init_params(key, input_dim, hidden_dim=10, latent_dim=5):
    """Deterministic synthetic weights (same shapes as the PyTorch module)."""
    ks = jax.random.split(key, 8)

    def lin(kw, kb, fan_in, fan_out):
        bound = 1.0 / jnp.sqrt(fan_in)
        w = jax.random.uniform(kw, (fan_in, fan_out), jnp.float32, -bound, bound)
        b = jax.random.uniform(kb, (1, fan_out), jnp.float32, -bound, bound)
        return w, b

    w1, b1 = lin(ks[0], ks[1], input_dim, hidden_dim)   # encoder[0]
    w2, b2 = lin(ks[2], ks[3], hidden_dim, latent_dim)  # encoder[2]
    w3, b3 = lin(ks[4], ks[5], latent_dim, hidden_dim)  # decoder[0]
    w4, b4 = lin(ks[6], ks[7], hidden_dim, input_dim)   # decoder[2]
    # cluster_centers is a parameter but unused by forward()
    # TODO(synk): cluster_assign (soft-assignment q) is not part of forward(); not kernelized.
    return (w1, b1, w2, b2, w3, b3, w4, b4)


def reference_forward(x, params):
    """Pure-JAX reference mirroring the kernel's precision (bf16 dots, f32 accum)."""
    w1, b1, w2, b2, w3, b3, w4, b4 = params
    bf = jnp.bfloat16
    h1 = jnp.maximum(jnp.dot(x.astype(bf), w1.astype(bf),
                             preferred_element_type=jnp.float32) + b1, 0.0)
    z = jnp.dot(h1.astype(bf), w2.astype(bf),
                preferred_element_type=jnp.float32) + b2
    h2 = jnp.maximum(jnp.dot(z.astype(bf), w3.astype(bf),
                             preferred_element_type=jnp.float32) + b3, 0.0)
    recon = jnp.dot(h2.astype(bf), w4.astype(bf),
                    preferred_element_type=jnp.float32) + b4
    return recon, z


if __name__ == "__main__":
    key = jax.random.PRNGKey(0)
    k_x, k_p = jax.random.split(key)

    B, input_dim, hidden_dim, latent_dim = 8, 32, 10, 5
    x = jax.random.normal(k_x, (B, input_dim), jnp.float32)
    params = init_params(k_p, input_dim, hidden_dim, latent_dim)

    recon, z = autoencoder_forward(x, params)
    recon = jax.block_until_ready(recon)
    z = jax.block_until_ready(z)

    recon_ref, z_ref = reference_forward(x, params)
    assert recon.shape == (B, input_dim) and z.shape == (B, latent_dim)
    assert jnp.allclose(recon, recon_ref, atol=1e-4, rtol=1e-4)
    assert jnp.allclose(z, z_ref, atol=1e-4, rtol=1e-4)

    print("KERNEL_OK")
</pallas_src>

<mosaic_0001>
module attributes {stable_mosaic.version = 11 : i64} {
  func.func @autoencoder_kernel(%arg0: i32, %arg1: memref<8x128xbf16, #tpu.memory_space<vmem>>, %arg2: memref<128x128xbf16, #tpu.memory_space<vmem>>, %arg3: memref<1x128xf32, #tpu.memory_space<vmem>>, %arg4: memref<128x128xbf16, #tpu.memory_space<vmem>>, %arg5: memref<1x128xf32, #tpu.memory_space<vmem>>, %arg6: memref<128x128xbf16, #tpu.memory_space<vmem>>, %arg7: memref<1x128xf32, #tpu.memory_space<vmem>>, %arg8: memref<128x128xbf16, #tpu.memory_space<vmem>>, %arg9: memref<1x128xf32, #tpu.memory_space<vmem>>, %arg10: memref<8x128xf32, #tpu.memory_space<vmem>>, %arg11: memref<8x128xf32, #tpu.memory_space<vmem>>) attributes {dimension_semantics = [#tpu.dimension_semantics<parallel>], iteration_bounds = array<i64: 1>, scalar_prefetch = 0 : i64, scratch_operands = 0 : i64, tpu.core_type = #tpu.core_type<tc>, window_params = [{transform_indices = @transform_0, window_bounds = array<i64: 8, 128>}, {pipeline_mode = #tpu.pipeline_mode<synchronous>, transform_indices = @transform_1, window_bounds = array<i64: 128, 128>}, {pipeline_mode = #tpu.pipeline_mode<synchronous>, transform_indices = @transform_2, window_bounds = array<i64: 1, 128>}, {pipeline_mode = #tpu.pipeline_mode<synchronous>, transform_indices = @transform_3, window_bounds = array<i64: 128, 128>}, {pipeline_mode = #tpu.pipeline_mode<synchronous>, transform_indices = @transform_4, window_bounds = array<i64: 1, 128>}, {pipeline_mode = #tpu.pipeline_mode<synchronous>, transform_indices = @transform_5, window_bounds = array<i64: 128, 128>}, {pipeline_mode = #tpu.pipeline_mode<synchronous>, transform_indices = @transform_6, window_bounds = array<i64: 1, 128>}, {pipeline_mode = #tpu.pipeline_mode<synchronous>, transform_indices = @transform_7, window_bounds = array<i64: 128, 128>}, {pipeline_mode = #tpu.pipeline_mode<synchronous>, transform_indices = @transform_8, window_bounds = array<i64: 1, 128>}, {transform_indices = @transform_9, window_bounds = array<i64: 8, 128>}, {transform_indices = @transform_10, window_bounds = array<i64: 8, 128>}]} {
    %c0 = arith.constant 0 : index
    %c0_0 = arith.constant 0 : index
    %0 = vector.load %arg1[%c0, %c0_0] : memref<8x128xbf16, #tpu.memory_space<vmem>>, vector<8x128xbf16>
    %c0_1 = arith.constant 0 : index
    %c0_2 = arith.constant 0 : index
    %1 = vector.load %arg2[%c0_1, %c0_2] : memref<128x128xbf16, #tpu.memory_space<vmem>>, vector<128x128xbf16>
    %cst = arith.constant dense<0.000000e+00> : vector<8x128xf32>
    %2 = tpu.matmul %0, %1, %cst {dimension_numbers = #tpu.dot_dimension_numbers<[1], [0], [0], [1], [0, 0, 1, 1], [], []>} : vector<8x128xbf16>, vector<128x128xbf16>, vector<8x128xf32> -> vector<8x128xf32>
    %c0_3 = arith.constant 0 : index
    %c0_4 = arith.constant 0 : index
    %3 = vector.load %arg3[%c0_3, %c0_4] : memref<1x128xf32, #tpu.memory_space<vmem>>, vector<1x128xf32>
    %4 = vector.broadcast %3 : vector<1x128xf32> to vector<8x128xf32>
    %5 = arith.addf %2, %4 : vector<8x128xf32>
    %cst_5 = arith.constant 0.000000e+00 : f32
    %6 = vector.broadcast %cst_5 : f32 to vector<8x128xf32>
    %7 = arith.maximumf %5, %6 : vector<8x128xf32>
    %8 = arith.truncf %7 : vector<8x128xf32> to vector<8x128xbf16>
    %c0_6 = arith.constant 0 : index
    %c0_7 = arith.constant 0 : index
    %9 = vector.load %arg4[%c0_6, %c0_7] : memref<128x128xbf16, #tpu.memory_space<vmem>>, vector<128x128xbf16>
    %cst_8 = arith.constant dense<0.000000e+00> : vector<8x128xf32>
    %10 = tpu.matmul %8, %9, %cst_8 {dimension_numbers = #tpu.dot_dimension_numbers<[1], [0], [0], [1], [0, 0, 1, 1], [], []>} : vector<8x128xbf16>, vector<128x128xbf16>, vector<8x128xf32> -> vector<8x128xf32>
    %c0_9 = arith.constant 0 : index
    %c0_10 = arith.constant 0 : index
    %11 = vector.load %arg5[%c0_9, %c0_10] : memref<1x128xf32, #tpu.memory_space<vmem>>, vector<1x128xf32>
    %12 = vector.broadcast %11 : vector<1x128xf32> to vector<8x128xf32>
    %13 = arith.addf %10, %12 : vector<8x128xf32>
    %14 = arith.truncf %13 : vector<8x128xf32> to vector<8x128xbf16>
    %c0_11 = arith.constant 0 : index
    %c0_12 = arith.constant 0 : index
    %15 = vector.load %arg6[%c0_11, %c0_12] : memref<128x128xbf16, #tpu.memory_space<vmem>>, vector<128x128xbf16>
    %cst_13 = arith.constant dense<0.000000e+00> : vector<8x128xf32>
    %16 = tpu.matmul %14, %15, %cst_13 {dimension_numbers = #tpu.dot_dimension_numbers<[1], [0], [0], [1], [0, 0, 1, 1], [], []>} : vector<8x128xbf16>, vector<128x128xbf16>, vector<8x128xf32> -> vector<8x128xf32>
    %c0_14 = arith.constant 0 : index
    %c0_15 = arith.constant 0 : index
    %17 = vector.load %arg7[%c0_14, %c0_15] : memref<1x128xf32, #tpu.memory_space<vmem>>, vector<1x128xf32>
    %18 = vector.broadcast %17 : vector<1x128xf32> to vector<8x128xf32>
    %19 = arith.addf %16, %18 : vector<8x128xf32>
    %cst_16 = arith.constant 0.000000e+00 : f32
    %20 = vector.broadcast %cst_16 : f32 to vector<8x128xf32>
    %21 = arith.maximumf %19, %20 : vector<8x128xf32>
    %22 = arith.truncf %21 : vector<8x128xf32> to vector<8x128xbf16>
    %c0_17 = arith.constant 0 : index
    %c0_18 = arith.constant 0 : index
    %23 = vector.load %arg8[%c0_17, %c0_18] : memref<128x128xbf16, #tpu.memory_space<vmem>>, vector<128x128xbf16>
    %cst_19 = arith.constant dense<0.000000e+00> : vector<8x128xf32>
    %24 = tpu.matmul %22, %23, %cst_19 {dimension_numbers = #tpu.dot_dimension_numbers<[1], [0], [0], [1], [0, 0, 1, 1], [], []>} : vector<8x128xbf16>, vector<128x128xbf16>, vector<8x128xf32> -> vector<8x128xf32>
    %c0_20 = arith.constant 0 : index
    %c0_21 = arith.constant 0 : index
    %25 = vector.load %arg9[%c0_20, %c0_21] : memref<1x128xf32, #tpu.memory_space<vmem>>, vector<1x128xf32>
    %26 = vector.broadcast %25 : vector<1x128xf32> to vector<8x128xf32>
    %27 = arith.addf %24, %26 : vector<8x128xf32>
    %c0_22 = arith.constant 0 : index
    %c0_23 = arith.constant 0 : index
    %28 = vector.load %arg11[%c0_22, %c0_23] : memref<8x128xf32, #tpu.memory_space<vmem>>, vector<8x128xf32>
    tpu.vector_store %arg11[%c0_22, %c0_23], %13 {strides = array<i32>} : memref<8x128xf32, #tpu.memory_space<vmem>>, vector<8x128xf32>,
    %c0_24 = arith.constant 0 : index
    %c0_25 = arith.constant 0 : index
    %29 = vector.load %arg10[%c0_24, %c0_25] : memref<8x128xf32, #tpu.memory_space<vmem>>, vector<8x128xf32>
    tpu.vector_store %arg10[%c0_24, %c0_25], %27 {strides = array<i32>} : memref<8x128xf32, #tpu.memory_space<vmem>>, vector<8x128xf32>,
    return
  }
  func.func @transform_0(%arg0: i32) -> (i32, i32) {
    %c0_i32 = arith.constant 0 : i32
    %c0_i32_0 = arith.constant 0 : i32
    return %arg0, %c0_i32 : i32, i32
  }
  func.func @transform_1(%arg0: i32) -> (i32, i32) {
    %c0_i32 = arith.constant 0 : i32
    %c0_i32_0 = arith.constant 0 : i32
    %c0_i32_1 = arith.constant 0 : i32
    return %c0_i32, %c0_i32_0 : i32, i32
  }
  func.func @transform_2(%arg0: i32) -> (i32, i32) {
    %c0_i32 = arith.constant 0 : i32
    %c0_i32_0 = arith.constant 0 : i32
    %c0_i32_1 = arith.constant 0 : i32
    return %c0_i32, %c0_i32_0 : i32, i32
  }
  func.func @transform_3(%arg0: i32) -> (i32, i32) {
    %c0_i32 = arith.constant 0 : i32
    %c0_i32_0 = arith.constant 0 : i32
    %c0_i32_1 = arith.constant 0 : i32
    return %c0_i32, %c0_i32_0 : i32, i32
  }
  func.func @transform_4(%arg0: i32) -> (i32, i32) {
    %c0_i32 = arith.constant 0 : i32
    %c0_i32_0 = arith.constant 0 : i32
    %c0_i32_1 = arith.constant 0 : i32
    return %c0_i32, %c0_i32_0 : i32, i32
  }
  func.func @transform_5(%arg0: i32) -> (i32, i32) {
    %c0_i32 = arith.constant 0 : i32
    %c0_i32_0 = arith.constant 0 : i32
    %c0_i32_1 = arith.constant 0 : i32
    return %c0_i32, %c0_i32_0 : i32, i32
  }
  func.func @transform_6(%arg0: i32) -> (i32, i32) {
    %c0_i32 = arith.constant 0 : i32
    %c0_i32_0 = arith.constant 0 : i32
    %c0_i32_1 = arith.constant 0 : i32
    return %c0_i32, %c0_i32_0 : i32, i32
  }
  func.func @transform_7(%arg0: i32) -> (i32, i32) {
    %c0_i32 = arith.constant 0 : i32
    %c0_i32_0 = arith.constant 0 : i32
    %c0_i32_1 = arith.constant 0 : i32
    return %c0_i32, %c0_i32_0 : i32, i32
  }
  func.func @transform_8(%arg0: i32) -> (i32, i32) {
    %c0_i32 = arith.constant 0 : i32
    %c0_i32_0 = arith.constant 0 : i32
    %c0_i32_1 = arith.constant 0 : i32
    return %c0_i32, %c0_i32_0 : i32, i32
  }
  func.func @transform_9(%arg0: i32) -> (i32, i32) {
    %c0_i32 = arith.constant 0 : i32
    %c0_i32_0 = arith.constant 0 : i32
    return %arg0, %c0_i32 : i32, i32
  }
  func.func @transform_10(%arg0: i32) -> (i32, i32) {
    %c0_i32 = arith.constant 0 : i32
    %c0_i32_0 = arith.constant 0 : i32
    return %arg0, %c0_i32 : i32, i32
  }
}

</mosaic_0001>

<bundles_post_ra>
// kernel: tpu_custom_call.1
= control target key start
LH: loop header
LB: loop body
LE: loop exit
PB: predicated region body
PF: predicated region fallthrough
CT: control target
= control target key end

     0   :  { %16 = vsyncpa [#allocation3], 0  ;;  %s1159_s0 = inlined_call_operand.hbm [shape: bf16[8,128], index: 0, kind: input, shape index: {}]   ;;  %s1160_s1 = inlined_call_operand.hbm [shape: bf16[128,128], index: 1, kind: input, shape index: {}]   ;;  %s1161_s2 = inlined_call_operand.vmem [shape: f32[1,128], index: 2, kind: input, shape index: {}]   ;;  %s1162_s3 = inlined_call_operand.hbm [shape: bf16[128,128], index: 3, kind: input, shape index: {}]   ;;  %s1163_s4 = inlined_call_operand.vmem [shape: f32[1,128], index: 4, kind: input, shape index: {}]   ;;  %s1164_s5 = inlined_call_operand.hbm [shape: bf16[128,128], index: 5, kind: input, shape index: {}]   ;;  %s1165_s6 = inlined_call_operand.vmem [shape: f32[1,128], index: 6, kind: input, shape index: {}]   ;;  %s1166_s7 = inlined_call_operand.hbm [shape: bf16[128,128], index: 7, kind: input, shape index: {}]   ;;  %s1167_s8 = inlined_call_operand.vmem [shape: f32[1,128], index: 8, kind: input, shape index: {}]   ;;  %s1168_s9 = inlined_call_operand.hbm [shape: f32[8,128], index: 9, kind: output, shape index: {0}]   ;;  %s1169_s10 = inlined_call_operand.hbm [shape: f32[8,128], index: 10, kind: output, shape index: {1}]  }
   0x1   :  { %17 = vsyncpa [#allocation6], 0 }
   0x2   :  { %18 = vsyncpa [#allocation9], 0 }
   0x3   :  { %19 = vsyncpa [#allocation4], 0 }
   0x4   :  { %20 = vsyncpa [#allocation13], 0  ;;  %s945_s13 = smov [#allocation5]   ;;  %s781_s17 = scalar_lea.hbm %s1160_s1, 1024 }
   0x5   :  { %s36_s14 = sshll.u32 %s945_s13, 4  ;;  %p782_p0 = scmp.ne.s32.totalorder %s1160_s1, %s781_s17  ;;  %s37_s14 = int_to_ptr.vmem [resolvable:$true] %s36_s14 }
   0x6   :  { %p785_p1 = scmp.lt.u32.totalorder %s781_s17, %s1160_s1 }
   0x8   :  { %p787_p2 = pnand %p785_p1, %p782_p0 }
   0xa   :  { %790 = shalt.err (!%p787_p2)
}
   0xb   :  { %s791_s22 = scalar_lea.vmem %s37_s14, 1024  ;;  %p796_p4 = scmp.lt.s32.totalorder %s37_s14, %s37_s14 }
   0xc   :  { %p792_p3 = scmp.ne.s32.totalorder %s37_s14, %s791_s22  ;;  %p797_p5 = scmp.lt.s32.totalorder %s791_s22, %s791_s22 }
   0xe   :  { %p798_p6 = por %p797_p5, %p796_p4 }
  0x10   :  { %p799_p7 = pnand %p798_p6, %p792_p3 }
  0x12   :  { %802 = shalt.err (!%p799_p7)
}
  0x13   :  { %s946_s23 = smov 64   ;;  %s947_s24 = smov 4  }
  0x14   :  { %42 = dma.hbm_to_vmem [thread:$0]  %s1160_s1, 1024, %s37_s14, [#allocation6], %s946_s23, %s946_s23, %s947_s24  }
  0x15   :  { %s948_s27 = smov [#allocation8]   ;;  %s949_s29 = smov [#allocation2]  }
  0x16   :  { %s64_s28 = sshll.u32 %s948_s27, 4  ;;  %s27_s30 = sshll.u32 %s949_s29, 4  ;;  %s65_s28 = int_to_ptr.vmem [resolvable:$true] %s64_s28  ;;  %s28_s30 = int_to_ptr.vmem [resolvable:$true] %s27_s30 }
  0x17   :  { %s803_s13 = scalar_lea.hbm %s1164_s5, 1024 }
  0x18   :  { %p804_p8 = scmp.ne.s32.totalorder %s1164_s5, %s803_s13  ;;  %p807_p9 = scmp.lt.u32.totalorder %s803_s13, %s1164_s5 }
  0x1a   :  { %p809_p10 = pnand %p807_p9, %p804_p8 }
  0x1c   :  { %812 = shalt.err (!%p809_p10)
}
  0x1d   :  { %s813_s1 = scalar_lea.vmem %s65_s28, 1024  ;;  %p818_p12 = scmp.lt.s32.totalorder %s65_s28, %s65_s28 }
  0x1e   :  { %p814_p11 = scmp.ne.s32.totalorder %s65_s28, %s813_s1  ;;  %p819_p13 = scmp.lt.s32.totalorder %s813_s1, %s813_s1 }
  0x20   :  { %p820_p0 = por %p819_p13, %p818_p12 }
  0x22   :  { %p821_p1 = pnand %p820_p0, %p814_p11 }
  0x24   :  { %824 = shalt.err (!%p821_p1)
}
  0x25   :  { %70 = dma.hbm_to_vmem [thread:$0]  %s1164_s5, 1024, %s65_s28, [#allocation9], %s946_s23, %s946_s23, %s947_s24  }
  0x26   :  { %s825_s22 = scalar_lea.hbm %s1159_s0, 64 }
  0x27   :  { %p826_p2 = scmp.ne.s32.totalorder %s1159_s0, %s825_s22  ;;  %p829_p3 = scmp.lt.u32.totalorder %s825_s22, %s1159_s0 }
  0x29   :  { %p831_p4 = pnand %p829_p3, %p826_p2 }
  0x2b   :  { %834 = shalt.err (!%p831_p4)
}
  0x2c   :  { %s835_s11 = scalar_lea.vmem %s28_s30, 64  ;;  %p840_p6 = scmp.lt.s32.totalorder %s28_s30, %s28_s30 }
  0x2d   :  { %p836_p5 = scmp.ne.s32.totalorder %s28_s30, %s835_s11  ;;  %p841_p7 = scmp.lt.s32.totalorder %s835_s11, %s835_s11 }
  0x2f   :  { %p842_p8 = por %p841_p7, %p840_p6 }
  0x31   :  { %p843_p9 = pnand %p842_p8, %p836_p5 }
  0x33   :  { %846 = shalt.err (!%p843_p9)
}
  0x34   :  { %30 = dma.hbm_to_vmem [thread:$0]  %s1159_s0, 64, %s28_s30, [#allocation3]  }
  0x35   :  { %s950_s12 = smov [#allocation7]   ;;  %s951_s15 = smov [#allocation10]  }
  0x36   :  { %s50_s13 = sshll.u32 %s950_s12, 4  ;;  %s78_s16 = sshll.u32 %s951_s15, 4  ;;  %s51_s13 = int_to_ptr.vmem [resolvable:$true] %s50_s13  ;;  %s79_s16 = int_to_ptr.vmem [resolvable:$true] %s78_s16 }
  0x37   :  { %s847_s1 = scalar_lea.hbm %s1162_s3, 1024 }
  0x38   :  { %p848_p10 = scmp.ne.s32.totalorder %s1162_s3, %s847_s1  ;;  %p851_p11 = scmp.lt.u32.totalorder %s847_s1, %s1162_s3 }
  0x3a   :  { %p853_p12 = pnand %p851_p11, %p848_p10 }
  0x3c   :  { %856 = shalt.err (!%p853_p12)
}
  0x3d   :  { %s857_s0 = scalar_lea.vmem %s51_s13, 1024  ;;  %p862_p0 = scmp.lt.s32.totalorder %s51_s13, %s51_s13 }
  0x3e   :  { %p858_p13 = scmp.ne.s32.totalorder %s51_s13, %s857_s0  ;;  %p863_p1 = scmp.lt.s32.totalorder %s857_s0, %s857_s0 }
  0x40   :  { %p864_p2 = por %p863_p1, %p862_p0 }
  0x42   :  { %p865_p3 = pnand %p864_p2, %p858_p13 }
  0x44   :  { %868 = shalt.err (!%p865_p3)
}
  0x45   :  { %56 = dma.hbm_to_vmem [thread:$0]  %s1162_s3, 1024, %s51_s13, [#allocation6], %s946_s23, %s946_s23, %s947_s24  }
  0x46   :  { %s869_s27 = scalar_lea.hbm %s1166_s7, 1024 }
  0x47   :  { %p870_p4 = scmp.ne.s32.totalorder %s1166_s7, %s869_s27  ;;  %p873_p5 = scmp.lt.u32.totalorder %s869_s27, %s1166_s7 }
  0x49   :  { %p875_p6 = pnand %p873_p5, %p870_p4 }
  0x4b   :  { %878 = shalt.err (!%p875_p6)
}
  0x4c   :  { %s879_s12 = scalar_lea.vmem %s79_s16, 1024  ;;  %p884_p8 = scmp.lt.s32.totalorder %s79_s16, %s79_s16 }
  0x4d   :  { %p880_p7 = scmp.ne.s32.totalorder %s79_s16, %s879_s12  ;;  %p885_p9 = scmp.lt.s32.totalorder %s879_s12, %s879_s12 }
  0x4f   :  { %p886_p10 = por %p885_p9, %p884_p8 }
  0x51   :  { %p887_p11 = pnand %p886_p10, %p880_p7 }
  0x53   :  { %890 = shalt.err (!%p887_p11)
}
  0x54   :  { %84 = dma.hbm_to_vmem [thread:$0]  %s1166_s7, 1024, %s79_s16, [#allocation9], %s946_s23, %s946_s23, %s947_s24  }
  0x55   :  { %935 = dma.done.wait [#allocation3], 64  }
  0x56   :  { %936 = vsyncadd [#allocation3], 4294967232 }
  0x57   :  { %937 = dma.done.wait [#allocation6], 2048  }
  0x58   :  { %938 = vsyncadd [#allocation6], 4294965248 }
  0x59   :  { %939 = dma.done.wait [#allocation9], 2048  }
  0x5a   :  { %940 = vsyncadd [#allocation9], 4294965248  ;;  %v952_v0 = vmov 0.0   ;;  %vm953_vm0 = vmmov 0   ;;  %v749_v1 = vld [vmem:[#allocation5] sm:$0xff]   ;;  %v750_v2 = vld [vmem:[#allocation5 + $0x8] sm:$0xff]  }
  0x5b   :  { %658 = vmatprep.subr.bf16.mxu0 %v952_v0  ;;  %674 = vmatprep.mubr.msk.bf16.mxu0 %vm953_vm0, %v952_v0  ;;  %v751_v3 = vld [vmem:[#allocation5 + $0x10] sm:$0xff]   ;;  %v757_v4 = vld [vmem:[#allocation7] sm:$0xff]   ;;  %v752_v5 = vld [vmem:[#allocation5 + $0x18] sm:$0xff]  }
  0x5c   :  { %678 = vmatprep.subr.bf16.mxu1 %v952_v0  ;;  %694 = vmatprep.mubr.msk.bf16.mxu1 %vm953_vm0, %v952_v0  ;;  %v758_v6 = vld [vmem:[#allocation7 + $0x8] sm:$0xff]   ;;  %v753_v7 = vld [vmem:[#allocation5 + $0x20] sm:$0xff]   ;;  %v759_v8 = vld [vmem:[#allocation7 + $0x10] sm:$0xff]  }
  0x5d   :  { %659 = vmatpush3.bf16.msra.mxu0 %v749_v1  ;;  %679 = vmatpush3.bf16.msra.mxu1 %v757_v4  ;;  %v754_v9 = vld [vmem:[#allocation5 + $0x28] sm:$0xff]   ;;  %v760_v10 = vld [vmem:[#allocation7 + $0x18] sm:$0xff]   ;;  %v755_v11 = vld [vmem:[#allocation5 + $0x30] sm:$0xff]  }
  0x5e   :  { %660 = vmatprep.subr.bf16.mxu0 %v952_v0  ;;  %680 = vmatprep.subr.bf16.mxu1 %v952_v0  ;;  %v761_v12 = vld [vmem:[#allocation7 + $0x20] sm:$0xff]   ;;  %v756_v13 = vld [vmem:[#allocation5 + $0x38] sm:$0xff]   ;;  %v762_v14 = vld [vmem:[#allocation7 + $0x28] sm:$0xff]  }
  0x5f   :  { %v103_v15 = vld [vmem:[#allocation2] sm:$0xf]  ;;  %v763_v16 = vld [vmem:[#allocation7 + $0x30] sm:$0xff]   ;;  %v765_v18 = vld [vmem:[#allocation8] sm:$0xff]  }
  0x60   :  { %v764_v17 = vld [vmem:[#allocation7 + $0x38] sm:$0xff]   ;;  %v766_v19 = vld [vmem:[#allocation8 + $0x8] sm:$0xff]   ;;  %v767_v20 = vld [vmem:[#allocation8 + $0x10] sm:$0xff]  }
  0x61   :  { %661 = vmatpush3.bf16.msra.mxu0 %v750_v2  ;;  %681 = vmatpush3.bf16.msra.mxu1 %v758_v6  ;;  %v768_v21 = vld [vmem:[#allocation8 + $0x18] sm:$0xff]   ;;  %v769_v22 = vld [vmem:[#allocation8 + $0x20] sm:$0xff]   ;;  %v770_v23 = vld [vmem:[#allocation8 + $0x28] sm:$0xff]  }
  0x62   :  { %662 = vmatprep.subr.bf16.mxu0 %v952_v0  ;;  %682 = vmatprep.subr.bf16.mxu1 %v952_v0  ;;  %v771_v24 = vld [vmem:[#allocation8 + $0x30] sm:$0xff]   ;;  %v586_v25 = vld [vmem:[%s1161_s2] ss:$0 sm:$0xff]  ;;  %v773_v34 = vld [vmem:[#allocation10] sm:$0xff]  }
  0x63   :  { %v772_v33 = vld [vmem:[#allocation8 + $0x38] sm:$0xff]   ;;  %v774_v35 = vld [vmem:[#allocation10 + $0x8] sm:$0xff]   ;;  %v775_v36 = vld [vmem:[#allocation10 + $0x10] sm:$0xff]  }
  0x64   :  { %v776_v37 = vld [vmem:[#allocation10 + $0x18] sm:$0xff]   ;;  %v777_v38 = vld [vmem:[#allocation10 + $0x20] sm:$0xff]   ;;  %v778_v39 = vld [vmem:[#allocation10 + $0x28] sm:$0xff]  }
  0x65   :  { %663 = vmatpush3.bf16.msra.mxu0 %v751_v3  ;;  %683 = vmatpush3.bf16.msra.mxu1 %v759_v8  ;;  %v595_v40 = vld [vmem:[%s1163_s4] ss:$0 sm:$0xff]  ;;  %v779_v47 = vld [vmem:[#allocation10 + $0x30] sm:$0xff]   ;;  %s954_s4 = smov [#allocation12]  }
  0x66   :  { %664 = vmatprep.subr.bf16.mxu0 %v952_v0  ;;  %684 = vmatprep.subr.bf16.mxu1 %v952_v0  ;;  %v780_v48 = vld [vmem:[#allocation10 + $0x38] sm:$0xff]   ;;  %s571_s17 = sshll.u32 %s954_s4, 4  ;;  %s572_s17 = int_to_ptr.vmem [resolvable:$true] %s571_s17 }
  0x67   :  { %v604_v49 = vld [vmem:[%s1165_s6] ss:$0 sm:$0xff]  ;;  %s891_s18 = scalar_lea.vmem %s572_s17, 128  ;;  %p896_p13 = scmp.lt.s32.totalorder %s572_s17, %s572_s17 }
  0x68   :  { %p892_p12 = scmp.ne.s32.totalorder %s572_s17, %s891_s18  ;;  %p897_p0 = scmp.lt.s32.totalorder %s891_s18, %s891_s18 }
  0x69   :  { %665 = vmatpush3.bf16.msra.mxu0 %v752_v5  ;;  %685 = vmatpush3.bf16.msra.mxu1 %v760_v10 }
  0x6a   :  { %666 = vmatprep.subr.bf16.mxu0 %v952_v0  ;;  %686 = vmatprep.subr.bf16.mxu1 %v952_v0  ;;  %p898_p1 = por %p897_p0, %p896_p13 }
  0x6c   :  { %p899_p2 = pnand %p898_p1, %p892_p12 }
  0x6d   :  { %667 = vmatpush3.bf16.msra.mxu0 %v753_v7  ;;  %687 = vmatpush3.bf16.msra.mxu1 %v761_v12 }
  0x6e   :  { %668 = vmatprep.subr.bf16.mxu0 %v952_v0  ;;  %688 = vmatprep.subr.bf16.mxu1 %v952_v0 }
  0x71   :  { %669 = vmatpush3.bf16.msra.mxu0 %v754_v9  ;;  %689 = vmatpush3.bf16.msra.mxu1 %v762_v14 }
  0x72   :  { %670 = vmatprep.subr.bf16.mxu0 %v952_v0  ;;  %690 = vmatprep.subr.bf16.mxu1 %v952_v0 }
  0x75   :  { %671 = vmatpush3.bf16.msra.mxu0 %v755_v11  ;;  %691 = vmatpush3.bf16.msra.mxu1 %v763_v16 }
  0x76   :  { %672 = vmatprep.subr.bf16.mxu0 %v952_v0  ;;  %692 = vmatprep.subr.bf16.mxu1 %v952_v0 }
  0x79   :  { %673 = vmatpush3.bf16.msra.mxu0 %v756_v13  ;;  %693 = vmatpush3.bf16.msra.mxu1 %v764_v17 }
  0x7a   :  { %698 = vmatprep.subr.bf16.mxu0 %v952_v0  ;;  %718 = vmatprep.subr.bf16.mxu1 %v952_v0 }
  0x7c   :  { %675 = vmatmul.mubr.bf16.vlgmr.msra.gmra.mrb[0].mxu0 %v103_v15 }
  0x7d   :  { %714 = vmatprep.mubr.msk.bf16.mxu0 %vm953_vm0, %v952_v0  ;;  %699 = vmatpush3.bf16.msra.mxu0 %v765_v18 }
  0x7e   :  { %700 = vmatprep.subr.bf16.mxu0 %v952_v0 }
  0x81   :  { %701 = vmatpush3.bf16.msra.mxu0 %v766_v19 }
  0x82   :  { %702 = vmatprep.subr.bf16.mxu0 %v952_v0 }
  0x85   :  { %703 = vmatpush3.bf16.msra.mxu0 %v767_v20 }
  0x86   :  { %704 = vmatprep.subr.bf16.mxu0 %v952_v0 }
  0x89   :  { %705 = vmatpush3.bf16.msra.mxu0 %v768_v21 }
  0x8a   :  { %706 = vmatprep.subr.bf16.mxu0 %v952_v0 }
  0x8d   :  { %707 = vmatpush3.bf16.msra.mxu0 %v769_v22 }
  0x8e   :  { %708 = vmatprep.subr.bf16.mxu0 %v952_v0 }
  0x91   :  { %709 = vmatpush3.bf16.msra.mxu0 %v770_v23 }
  0x92   :  { %710 = vmatprep.subr.bf16.mxu0 %v952_v0 }
  0x95   :  { %711 = vmatpush3.bf16.msra.mxu0 %v771_v24 }
  0x96   :  { %712 = vmatprep.subr.bf16.mxu0 %v952_v0 }
  0x99   :  { %713 = vmatpush3.bf16.msra.mxu0 %v772_v33 }
 0x14f   :  { %v209_v26 = vpop.f32.mrb[0].mxu0 }
 0x150   :  { %v210_v27 = vadd.f32 %v586_v25, %v209_v26  ;;  %v676_v28 = vpop.f32.mrb[1].mxu0 }
 0x151   :  { %v212_v29 = vpop.f32.mrb[2].mxu0 }
 0x152   :  { %v215_v30 = vmax.f32 %v210_v27, 0.0  ;;  %v677_v31 = vpop.f32.mrb[3].mxu0 }
 0x154   :  { %v216_v32 = vpack.c.bf16 %v215_v30, %v215_v30 }
 0x156   :  { %695 = vmatmul.mubr.bf16.vlgmr.msra.gmra.mrb[0].mxu1 %v216_v32 }
 0x157   :  { %734 = vmatprep.mubr.msk.bf16.mxu1 %vm953_vm0, %v952_v0  ;;  %719 = vmatpush3.bf16.msra.mxu1 %v773_v34 }
 0x158   :  { %720 = vmatprep.subr.bf16.mxu1 %v952_v0 }
 0x15b   :  { %721 = vmatpush3.bf16.msra.mxu1 %v774_v35 }
 0x15c   :  { %722 = vmatprep.subr.bf16.mxu1 %v952_v0 }
 0x15f   :  { %723 = vmatpush3.bf16.msra.mxu1 %v775_v36 }
 0x160   :  { %724 = vmatprep.subr.bf16.mxu1 %v952_v0 }
 0x163   :  { %725 = vmatpush3.bf16.msra.mxu1 %v776_v37 }
 0x164   :  { %726 = vmatprep.subr.bf16.mxu1 %v952_v0 }
 0x167   :  { %727 = vmatpush3.bf16.msra.mxu1 %v777_v38 }
 0x168   :  { %728 = vmatprep.subr.bf16.mxu1 %v952_v0 }
 0x16b   :  { %729 = vmatpush3.bf16.msra.mxu1 %v778_v39 }
 0x16c   :  { %730 = vmatprep.subr.bf16.mxu1 %v952_v0 }
 0x16f   :  { %731 = vmatpush3.bf16.msra.mxu1 %v779_v47 }
 0x170   :  { %732 = vmatprep.subr.bf16.mxu1 %v952_v0 }
 0x173   :  { %733 = vmatpush3.bf16.msra.mxu1 %v780_v48 }
 0x229   :  { %v322_v41 = vpop.f32.mrb[0].mxu1 }
 0x22a   :  { %v323_v42 = vadd.f32 %v595_v40, %v322_v41  ;;  %v696_v43 = vpop.f32.mrb[1].mxu1 }
 0x22b   :  { %v325_v44 = vpop.f32.mrb[2].mxu1 }
 0x22c   :  { %v328_v45 = vpack.c.bf16 %v323_v42, %v323_v42  ;;  %553 = vst [vmem:[#allocation12] sm:$0xff] %v323_v42  ;;  %v697_v46 = vpop.f32.mrb[3].mxu1 }
 0x22e   :  { %715 = vmatmul.mubr.bf16.vlgmr.msra.gmra.mrb[4].mxu0 %v328_v45 }
 0x301   :  { %v434_v50 = vpop.f32.mrb[4].mxu0 }
 0x302   :  { %v435_v51 = vadd.f32 %v604_v49, %v434_v50  ;;  %v716_v52 = vpop.f32.mrb[5].mxu0 }
 0x303   :  { %v437_v53 = vpop.f32.mrb[6].mxu0 }
 0x304   :  { %v440_v54 = vmax.f32 %v435_v51, 0.0  ;;  %v717_v55 = vpop.f32.mrb[7].mxu0 }
 0x306   :  { %v441_v56 = vpack.c.bf16 %v440_v54, %v440_v54 }
 0x308   :  { %735 = vmatmul.mubr.bf16.vlgmr.msra.gmra.mrb[4].mxu1 %v441_v56 }
 0x309   :  { %902 = shalt.err (!%p899_p2)
}
 0x30a   :  { %s903_s14 = scalar_lea.hbm %s1169_s10, 128 }
 0x30b   :  { %p904_p3 = scmp.ne.s32.totalorder %s1169_s10, %s903_s14  ;;  %p907_p4 = scmp.lt.u32.totalorder %s903_s14, %s1169_s10 }
 0x30d   :  { %p909_p5 = pnand %p907_p4, %p904_p3 }
 0x30f   :  { %912 = shalt.err (!%p909_p5)
}
 0x310   :  { %574 = dma.vmem_to_hbm [thread:$0]  %s572_s17, 128, %s1169_s10, [#allocation13]   ;;  %v613_v57 = vld [vmem:[%s1167_s8] ss:$0 sm:$0xff] }
 0x311   :  { %s955_s27 = smov [#allocation11]  }
 0x312   :  { %s561_s29 = sshll.u32 %s955_s27, 4  ;;  %s562_s29 = int_to_ptr.vmem [resolvable:$true] %s561_s29 }
 0x313   :  { %s913_s11 = scalar_lea.vmem %s562_s29, 128  ;;  %p918_p7 = scmp.lt.s32.totalorder %s562_s29, %s562_s29 }
 0x314   :  { %p914_p6 = scmp.ne.s32.totalorder %s562_s29, %s913_s11  ;;  %p919_p8 = scmp.lt.s32.totalorder %s913_s11, %s913_s11 }
 0x316   :  { %p920_p9 = por %p919_p8, %p918_p7 }
 0x318   :  { %p921_p10 = pnand %p920_p9, %p914_p6 }
 0x3db   :  { %v547_v58 = vpop.f32.mrb[4].mxu1 }
 0x3dc   :  { %v548_v59 = vadd.f32 %v613_v57, %v547_v58  ;;  %v736_v60 = vpop.f32.mrb[5].mxu1 }
 0x3dd   :  { %v550_v61 = vpop.f32.mrb[6].mxu1 }
 0x3de   :  { %554 = vst [vmem:[#allocation11] sm:$0xff] %v548_v59  ;;  %v737_v62 = vpop.f32.mrb[7].mxu1 }
 0x3df   :  { %924 = shalt.err (!%p921_p10)
}
 0x3e0   :  { %s925_s8 = scalar_lea.hbm %s1168_s9, 128 }
 0x3e1   :  { %p926_p11 = scmp.ne.s32.totalorder %s1168_s9, %s925_s8  ;;  %p929_p12 = scmp.lt.u32.totalorder %s925_s8, %s1168_s9 }
 0x3e3   :  { %p931_p13 = pnand %p929_p12, %p926_p11 }
 0x3e5   :  { %934 = shalt.err (!%p931_p13)
}
 0x3e6   :  { %564 = dma.vmem_to_hbm [thread:$0]  %s562_s29, 128, %s1168_s9, [#allocation4]  }
 0x3e7   :  { %941 = dma.done.wait [#allocation4], 128  }
 0x3e8   :  { %942 = vsyncadd [#allocation4], 4294967168 }
 0x3e9   :  { %943 = dma.done.wait [#allocation13], 128  }
 0x3ea   :  { %944 = vsyncadd [#allocation13], 4294967168 }
 0x3eb   :  { %581 = vsyncpa [#allocation3], 1 }
 0x3ec   :  { %582 = vsyncpa [#allocation6], 1 }
 0x3ed   :  { %583 = vsyncpa [#allocation9], 1 }
 0x3ee   :  { %584 = vsyncpa [#allocation4], 1 }
 0x3ef   :  { %585 = vsyncpa [#allocation13], 1 }

</bundles_post_ra>
